<compile_context>
chip_gen: v6e
topology: v6e:2x2x1
jax: 0.10.0
libtpu: 0.0.40
codegen_flags: <defaults>
</compile_context>

<pallas_src>
import functools

import jax
import jax.numpy as jnp
from jax.experimental import pallas as pl
from jax.experimental.pallas import tpu as pltpu


def _compute_error_kernel(
    scal_ref,            # SMEM [2] f32: ut (decayed utility weight), e_eps = exp(eps)
    p_ref,               # VMEM [TN, E]  (f32 or bf16)
    x_ref,               # VMEM [TN, E]
    out_ref,             # VMEM [8, 128]: lane0=loss, lane1=privacy_error, lane2=delta_final_right
    acc_a,               # VMEM (1, half): lane-wise partials of delta_final (hockey + tail A)
    acc_b,               # VMEM (1, half): lane-wise partials of delta_final_dual
    acc_sse,             # VMEM (1, E):   lane-wise partials of squared error
    *masks,              # optional: mask_a, mask_b VMEM (1, half) when tails are not lane-aligned
    half: int,
    delta_events: int,       # "Delta" = element_size // (2 * range_begin)
    inv_count: float,        # 1 / (N * E) with the ORIGINAL (unpadded) N, for the MSE mean
    dp_sgd: bool,
    min_of_two_delta: bool,
    aligned_tail: bool,
):
    i = pl.program_id(1)          # inner (row-tile / reduction) axis

    @pl.when(i == 0)
    def _init():
        acc_a[...] = jnp.zeros_like(acc_a)
        acc_b[...] = jnp.zeros_like(acc_b)
        acc_sse[...] = jnp.zeros_like(acc_sse)
        if not aligned_tail:
            mask_a, mask_b = masks
            lane = jax.lax.broadcasted_iota(jnp.int32, (1, half), 1)
            mask_a[...] = (lane < delta_events).astype(jnp.float32)
            mask_b[...] = (lane >= half - delta_events).astype(jnp.float32)

    e_eps = scal_ref[1]

    p = p_ref[...].astype(jnp.float32)
    x = x_ref[...].astype(jnp.float32)

    # A/B halves are lane-aligned (element_size % 256 == 0 asserted in wrapper).
    p_a = p[:, :half]
    p_b = p[:, half:]

    # ---- method_fn: hockey-stick deltas at fixed eps (row-reduced only) ----
    h_a = jnp.maximum(p_a - e_eps * p_b, 0.0)
    h_b = jnp.maximum(p_b - e_eps * p_a, 0.0)

    if aligned_tail:
        # tail masses folded into the same accumulators via lane-aligned slices
        acc_a[...] += jnp.sum(h_a, axis=0, keepdims=True)
        acc_b[...] += jnp.sum(h_b, axis=0, keepdims=True)
        acc_a[:, :delta_events] += jnp.sum(
            p_a[:, :delta_events], axis=0, keepdims=True)
        acc_b[:, half - delta_events:] += jnp.sum(
            p_b[:, half - delta_events:], axis=0, keepdims=True)
    else:
        mask_a, mask_b = masks
        acc_a[...] += jnp.sum(h_a + p_a * mask_a[...], axis=0, keepdims=True)
        acc_b[...] += jnp.sum(h_b + p_b * mask_b[...], axis=0, keepdims=True)

    # ---- utility loss partial: sum of squared errors (row-reduced only) ----
    diff = p - x
    acc_sse[...] += jnp.sum(diff * diff, axis=0, keepdims=True)

    # ---- finalize: lane reduce once + linear-space loss combination ----
    @pl.when(i == pl.num_programs(1) - 1)
    def _finalize():
        ut = scal_ref[0]
        delta_final = jnp.sum(acc_a[...])
        delta_final_dual = jnp.sum(acc_b[...])
        utility_loss = jnp.sum(acc_sse[...]) * inv_count
        if dp_sgd:
            # NOTE: matches the torch module literally (a *select*, not a min).
            privacy_error = delta_final if min_of_two_delta else delta_final_dual
        else:
            privacy_error = delta_final + delta_final_dual
        loss = utility_loss * ut + privacy_error

        # lane-dense full-block store: lanes 0/1/2 carry the three scalars
        lane = jax.lax.broadcasted_iota(jnp.int32, (8, 128), 1)
        out_ref[...] = jnp.where(
            lane == 0, loss,
            jnp.where(lane == 1, privacy_error,
                      jnp.where(lane == 2, delta_final, 0.0)))


def _vmem_capacity_bytes() -> int:
    try:
        return int(pltpu.get_tpu_info().vmem_capacity_bytes)
    except Exception:
        return 128 * 1024 * 1024


def _sublane_multiple(dtype) -> int:
    # minimal sublane tile: 8 for 4-byte dtypes, 16 for 2-byte, 32 for 1-byte
    return 8 * max(1, 4 // jnp.dtype(dtype).itemsize)


def compute_error(
    p,
    x_coords,
    step,
    *,
    range_begin: int = 2,
    utility_weight: float = 1.0,
    utility_weight_halving_epochs: float = 50.0,
    utility_weight_minimum: float = 1e-3,
    eps: float = 1.0,
    utility_weight_decay: bool = True,
    dp_sgd: bool = False,
    min_of_two_delta: bool = False,
    materialize_ab: bool = True,
):
    """Returns (loss, privacy_error, delta_final_right, debug_tensors, A, B).

    fastmode=True semantics: debug_tensors == {}.  A and B are the preparer's
    halves of p; returned as wrapper-side slices (set materialize_ab=False to
    skip the copies and slice p yourself at the consumer).
    """
    n, element_size = p.shape
    assert x_coords.shape == (n, element_size)
    assert element_size % 256 == 0, (
        "element_size must be a multiple of 256 so the A/B halves and the "
        "128-lane tiles are lane-aligned")
    half = element_size // 2
    delta_events = element_size // (2 * range_begin)
    assert 1 <= delta_events <= half
    aligned_tail = (delta_events % 128 == 0)

    # ---- scalar epilogue hoisted out of the kernel ----
    step_f = jnp.asarray(step, jnp.float32)
    if utility_weight_decay:
        ut = jnp.maximum(
            utility_weight
            / jnp.power(jnp.float32(2.0), step_f / utility_weight_halving_epochs),
            utility_weight_minimum,
        )
    else:
        ut = jnp.asarray(utility_weight, jnp.float32)
    e_eps = jnp.exp(jnp.asarray(eps, jnp.float32))
    scalars = jnp.stack([ut, e_eps]).astype(jnp.float32)

    # ---- generation-aware tile / VMEM budget ----
    vmem_cap = _vmem_capacity_bytes()
    gen_cap = (44 << 20) if vmem_cap <= (64 << 20) else (64 << 20)   # headroom on v7x
    per_input_budget = min(8 << 20, gen_cap // 6)

    row_align = max(_sublane_multiple(p.dtype), _sublane_multiple(x_coords.dtype))
    bytes_per_row = element_size * (
        jnp.dtype(p.dtype).itemsize + jnp.dtype(x_coords.dtype).itemsize)

    # Shard rows across TensorCores (2x on v7x; harmless serial split on v5e/v6e).
    num_shards = 2 if n >= 2 * row_align else 1

    max_rows = max(row_align,
                   ((2 * per_input_budget) // bytes_per_row) // row_align * row_align)
    rows_per_shard = -(-n // num_shards)
    rows_needed = -(-rows_per_shard // row_align) * row_align
    tn = int(min(max_rows, rows_needed))

    tiles_per_shard = max(1, -(-n // (num_shards * tn)))
    n_pad = num_shards * tiles_per_shard * tn

    p_in, x_in = p, x_coords
    if n_pad != n:
        # zero rows contribute 0 to every partial sum (tail mass, hockey stick, SSE)
        p_in = jnp.pad(p, ((0, n_pad - n), (0, 0)))
        x_in = jnp.pad(x_coords, ((0, n_pad - n), (0, 0)))

    kernel = functools.partial(
        _compute_error_kernel,
        half=half,
        delta_events=delta_events,
        inv_count=1.0 / float(n * element_size),
        dp_sgd=dp_sgd,
        min_of_two_delta=min_of_two_delta,
        aligned_tail=aligned_tail,
    )

    tile_bytes = tn * bytes_per_row
    scratch_bytes = 4 * (2 * half + element_size
                         + (0 if aligned_tail else 2 * half)) + 8 * 128 * 4
    want = 2 * tile_bytes + scratch_bytes + (2 << 20)     # double-buffered inputs + slack
    vmem_limit = int(max(16 << 20, min(want, gen_cap)))

    cost = pl.CostEstimate(
        flops=8 * n_pad * element_size,
        transcendentals=0,
        bytes_accessed=n_pad * bytes_per_row + num_shards * 8 * 128 * 4,
    )

    scratch = [
        pltpu.VMEM((1, half), jnp.float32),
        pltpu.VMEM((1, half), jnp.float32),
        pltpu.VMEM((1, element_size), jnp.float32),
    ]
    if not aligned_tail:
        scratch += [pltpu.VMEM((1, half), jnp.float32),
                    pltpu.VMEM((1, half), jnp.float32)]

    out = pl.pallas_call(
        kernel,
        out_shape=jax.ShapeDtypeStruct((num_shards * 8, 128), jnp.float32),
        grid=(num_shards, tiles_per_shard),
        in_specs=[
            pl.BlockSpec(memory_space=pltpu.SMEM),                         # scalars
            pl.BlockSpec((tn, element_size),
                         lambda c, i: (c * tiles_per_shard + i, 0)),       # p
            pl.BlockSpec((tn, element_size),
                         lambda c, i: (c * tiles_per_shard + i, 0)),       # x_coords
        ],
        out_specs=pl.BlockSpec((8, 128), lambda c, i: (c, 0)),
        scratch_shapes=scratch,
        compiler_params=pltpu.CompilerParams(
            dimension_semantics=("parallel", "arbitrary"),
            vmem_limit_bytes=vmem_limit,
        ),
        cost_estimate=cost,
    )(scalars, p_in, x_in)

    # per-shard partial results are linear in the partial sums -> just add them
    per_shard = out.reshape(num_shards, 8, 128)[:, 0, :]
    totals = jnp.sum(per_shard, axis=0)
    loss = totals[0]
    privacy_error = totals[1]
    delta_final_right = totals[2]

    if materialize_ab:
        A = p[:, :half]
        B = p[:, half:]
    else:
        A, B = None, None
    debug_tensors = {}   # fastmode=True
    return loss, privacy_error, delta_final_right, debug_tensors, A, B


def _reference(p, x, step, *, range_begin=2, utility_weight=1.0, halving=50.0,
               ut_min=1e-3, eps=1.0, utility_weight_decay=True,
               dp_sgd=False, min_of_two_delta=False):
    # Pure-JAX reference mirroring the torch module's linear-space path.
    pf = p.astype(jnp.float32)
    xf = x.astype(jnp.float32)
    n, e = pf.shape
    half = e // 2
    d = e // (2 * range_begin)
    p_a, p_b = pf[:, :half], pf[:, half:]
    dist_ev = jnp.sum(pf[:, :d])
    dist_ev_dual = jnp.sum(pf[:, e - d:])
    ee = jnp.exp(jnp.float32(eps))
    delta = jnp.sum(jnp.maximum(p_a - ee * p_b, 0.0))
    delta_dual = jnp.sum(jnp.maximum(p_b - ee * p_a, 0.0))
    util = jnp.mean((pf - xf) ** 2)
    if utility_weight_decay:
        ut = jnp.maximum(utility_weight * jnp.float32(2.0) ** (-jnp.float32(step) / halving),
                         ut_min)
    else:
        ut = jnp.float32(utility_weight)
    df, dfd = delta + dist_ev, delta_dual + dist_ev_dual
    if dp_sgd:
        priv = df if min_of_two_delta else dfd
    else:
        priv = df + dfd
    return util * ut + priv, priv, df


if __name__ == "__main__":
    key = jax.random.PRNGKey(0)

    def make_inputs(k, n, e, dtype):
        k1, k2 = jax.random.split(k)
        logits = jax.random.normal(k1, (n, e), dtype=jnp.float32)
        pp = jax.nn.softmax(logits, axis=-1).astype(dtype)
        xx = (jax.random.normal(k2, (n, e), dtype=jnp.float32) * 0.01).astype(dtype)
        return pp, xx

    configs = [
        # (name, n, element_size, dtype, extra kwargs)
        ("small_f32_masked_tail", 8, 256, jnp.float32, {}),
        ("sharded_f32_aligned_tail", 24, 512, jnp.float32, {}),
        ("bf16_inputs", 24, 512, jnp.bfloat16, {}),
        ("dp_sgd_dual", 8, 256, jnp.float32, dict(dp_sgd=True, min_of_two_delta=False)),
    ]
    step = 10
    for idx, (name, n, e, dtype, kw) in enumerate(configs):
        p, x_coords = make_inputs(jax.random.fold_in(key, idx), n, e, dtype)
        loss, priv, dfr, dbg, A, B = jax.block_until_ready(
            compute_error(p, x_coords, step, **kw))
        ref_loss, ref_priv, ref_dfr = _reference(
            p, x_coords, step,
            dp_sgd=kw.get("dp_sgd", False),
            min_of_two_delta=kw.get("min_of_two_delta", False))
        assert jnp.allclose(loss, ref_loss, rtol=1e-5, atol=1e-6), name
        assert jnp.allclose(priv, ref_priv, rtol=1e-5, atol=1e-6), name
        assert jnp.allclose(dfr, ref_dfr, rtol=1e-5, atol=1e-6), name
        assert dbg == {}, name
        assert A.shape == (n, e // 2) and B.shape == (n, e // 2), name
        assert jnp.allclose(A.astype(jnp.float32), p[:, :e // 2].astype(jnp.float32)), name
        assert jnp.allclose(B.astype(jnp.float32), p[:, e // 2:].astype(jnp.float32)), name

    print("KERNEL_OK")
</pallas_src>

<mosaic_0001>
module attributes {stable_mosaic.version = 11 : i64} {
  func.func @_compute_error_kernel(%arg0: i32, %arg1: i32, %arg2: memref<2xf32, #tpu.memory_space<smem>>, %arg3: memref<8x256xf32, #tpu.memory_space<vmem>>, %arg4: memref<8x256xf32, #tpu.memory_space<vmem>>, %arg5: memref<8x128xf32, #tpu.memory_space<vmem>>, %arg6: memref<1x128xf32, #tpu.memory_space<vmem>>, %arg7: memref<1x128xf32, #tpu.memory_space<vmem>>, %arg8: memref<1x256xf32, #tpu.memory_space<vmem>>, %arg9: memref<1x128xf32, #tpu.memory_space<vmem>>, %arg10: memref<1x128xf32, #tpu.memory_space<vmem>>) attributes {dimension_semantics = [#tpu.dimension_semantics<parallel>, #tpu.dimension_semantics<arbitrary>], iteration_bounds = array<i64: 1, 1>, scalar_prefetch = 0 : i64, scratch_operands = 5 : i64, tpu.core_type = #tpu.core_type<tc>, window_params = [{transform_indices = @transform_0, window_bounds = array<i64: 2>}, {transform_indices = @transform_1, window_bounds = array<i64: 8, 256>}, {transform_indices = @transform_2, window_bounds = array<i64: 8, 256>}, {transform_indices = @transform_3, window_bounds = array<i64: 8, 128>}]} {
    %c0_i32 = arith.constant 0 : i32
    %0 = arith.cmpi eq, %arg1, %c0_i32 : i32
    %1 = arith.extui %0 : i1 to i32
    %c0_i32_0 = arith.constant 0 : i32
    %2 = arith.cmpi ne, %1, %c0_i32_0 : i32
    scf.if %2 {
      %cst_26 = arith.constant 0.000000e+00 : f32
      %46 = vector.broadcast %cst_26 : f32 to vector<1x128xf32>
      %c0_27 = arith.constant 0 : index
      %c0_28 = arith.constant 0 : index
      %47 = vector.load %arg6[%c0_27, %c0_28] : memref<1x128xf32, #tpu.memory_space<vmem>>, vector<1x128xf32>
      tpu.vector_store %arg6[%c0_27, %c0_28], %46 {strides = array<i32>} : memref<1x128xf32, #tpu.memory_space<vmem>>, vector<1x128xf32>,
      %cst_29 = arith.constant 0.000000e+00 : f32
      %48 = vector.broadcast %cst_29 : f32 to vector<1x128xf32>
      %c0_30 = arith.constant 0 : index
      %c0_31 = arith.constant 0 : index
      %49 = vector.load %arg7[%c0_30, %c0_31] : memref<1x128xf32, #tpu.memory_space<vmem>>, vector<1x128xf32>
      tpu.vector_store %arg7[%c0_30, %c0_31], %48 {strides = array<i32>} : memref<1x128xf32, #tpu.memory_space<vmem>>, vector<1x128xf32>,
      %cst_32 = arith.constant 0.000000e+00 : f32
      %50 = vector.broadcast %cst_32 : f32 to vector<1x256xf32>
      %c0_33 = arith.constant 0 : index
      %c0_34 = arith.constant 0 : index
      %51 = vector.load %arg8[%c0_33, %c0_34] : memref<1x256xf32, #tpu.memory_space<vmem>>, vector<1x256xf32>
      tpu.vector_store %arg8[%c0_33, %c0_34], %50 {strides = array<i32>} : memref<1x256xf32, #tpu.memory_space<vmem>>, vector<1x256xf32>,
      %52 = tpu.iota {dimensions = array<i32: 1>} : vector<1x128xi32>
      %c64_i32 = arith.constant 64 : i32
      %53 = vector.broadcast %c64_i32 : i32 to vector<1x128xi32>
      %54 = arith.cmpi slt, %52, %53 : vector<1x128xi32>
      %55 = arith.extui %54 : vector<1x128xi1> to vector<1x128xi32>
      %56 = arith.sitofp %55 : vector<1x128xi32> to vector<1x128xf32>
      %c0_35 = arith.constant 0 : index
      %c0_36 = arith.constant 0 : index
      %57 = vector.load %arg9[%c0_35, %c0_36] : memref<1x128xf32, #tpu.memory_space<vmem>>, vector<1x128xf32>
      tpu.vector_store %arg9[%c0_35, %c0_36], %56 {strides = array<i32>} : memref<1x128xf32, #tpu.memory_space<vmem>>, vector<1x128xf32>,
      %c64_i32_37 = arith.constant 64 : i32
      %58 = vector.broadcast %c64_i32_37 : i32 to vector<1x128xi32>
      %59 = arith.cmpi sge, %52, %58 : vector<1x128xi32>
      %60 = arith.extui %59 : vector<1x128xi1> to vector<1x128xi32>
      %61 = arith.sitofp %60 : vector<1x128xi32> to vector<1x128xf32>
      %c0_38 = arith.constant 0 : index
      %c0_39 = arith.constant 0 : index
      %62 = vector.load %arg10[%c0_38, %c0_39] : memref<1x128xf32, #tpu.memory_space<vmem>>, vector<1x128xf32>
      tpu.vector_store %arg10[%c0_38, %c0_39], %61 {strides = array<i32>} : memref<1x128xf32, #tpu.memory_space<vmem>>, vector<1x128xf32>,
    } else {
    }
    %c1 = arith.constant 1 : index
    %3 = memref.load %arg2[%c1] : memref<2xf32, #tpu.memory_space<smem>>
    %c0 = arith.constant 0 : index
    %c0_1 = arith.constant 0 : index
    %4 = vector.load %arg3[%c0, %c0_1] : memref<8x256xf32, #tpu.memory_space<vmem>>, vector<8x256xf32>
    %c0_2 = arith.constant 0 : index
    %c0_3 = arith.constant 0 : index
    %5 = vector.load %arg4[%c0_2, %c0_3] : memref<8x256xf32, #tpu.memory_space<vmem>>, vector<8x256xf32>
    %6 = vector.extract_strided_slice %4 {offsets = [0, 0], sizes = [8, 128], strides = [1, 1]} : vector<8x256xf32> to vector<8x128xf32>
    %7 = vector.extract_strided_slice %4 {offsets = [0, 128], sizes = [8, 128], strides = [1, 1]} : vector<8x256xf32> to vector<8x128xf32>
    %8 = vector.broadcast %3 : f32 to vector<8x128xf32>
    %9 = arith.mulf %8, %7 : vector<8x128xf32>
    %10 = arith.subf %6, %9 : vector<8x128xf32>
    %cst = arith.constant 0.000000e+00 : f32
    %11 = vector.broadcast %cst : f32 to vector<8x128xf32>
    %12 = arith.maximumf %10, %11 : vector<8x128xf32>
    %13 = vector.broadcast %3 : f32 to vector<8x128xf32>
    %14 = arith.mulf %13, %6 : vector<8x128xf32>
    %15 = arith.subf %7, %14 : vector<8x128xf32>
    %cst_4 = arith.constant 0.000000e+00 : f32
    %16 = vector.broadcast %cst_4 : f32 to vector<8x128xf32>
    %17 = arith.maximumf %15, %16 : vector<8x128xf32>
    %c0_5 = arith.constant 0 : index
    %c0_6 = arith.constant 0 : index
    %18 = vector.load %arg6[%c0_5, %c0_6] : memref<1x128xf32, #tpu.memory_space<vmem>>, vector<1x128xf32>
    %c0_7 = arith.constant 0 : index
    %c0_8 = arith.constant 0 : index
    %19 = vector.load %arg9[%c0_7, %c0_8] : memref<1x128xf32, #tpu.memory_space<vmem>>, vector<1x128xf32>
    %20 = vector.broadcast %19 : vector<1x128xf32> to vector<8x128xf32>
    %21 = arith.mulf %6, %20 : vector<8x128xf32>
    %22 = arith.addf %12, %21 : vector<8x128xf32>
    %cst_9 = arith.constant dense<0.000000e+00> : vector<128xf32>
    %23 = vector.multi_reduction <add>, %22, %cst_9 [0] : vector<8x128xf32> to vector<128xf32>
    %24 = vector.shape_cast %23 : vector<128xf32> to vector<1x128xf32>
    %25 = arith.addf %18, %24 : vector<1x128xf32>
    %c0_10 = arith.constant 0 : index
    %c0_11 = arith.constant 0 : index
    %26 = vector.load %arg6[%c0_10, %c0_11] : memref<1x128xf32, #tpu.memory_space<vmem>>, vector<1x128xf32>
    tpu.vector_store %arg6[%c0_10, %c0_11], %25 {strides = array<i32>} : memref<1x128xf32, #tpu.memory_space<vmem>>, vector<1x128xf32>,
    %c0_12 = arith.constant 0 : index
    %c0_13 = arith.constant 0 : index
    %27 = vector.load %arg7[%c0_12, %c0_13] : memref<1x128xf32, #tpu.memory_space<vmem>>, vector<1x128xf32>
    %c0_14 = arith.constant 0 : index
    %c0_15 = arith.constant 0 : index
    %28 = vector.load %arg10[%c0_14, %c0_15] : memref<1x128xf32, #tpu.memory_space<vmem>>, vector<1x128xf32>
    %29 = vector.broadcast %28 : vector<1x128xf32> to vector<8x128xf32>
    %30 = arith.mulf %7, %29 : vector<8x128xf32>
    %31 = arith.addf %17, %30 : vector<8x128xf32>
    %cst_16 = arith.constant dense<0.000000e+00> : vector<128xf32>
    %32 = vector.multi_reduction <add>, %31, %cst_16 [0] : vector<8x128xf32> to vector<128xf32>
    %33 = vector.shape_cast %32 : vector<128xf32> to vector<1x128xf32>
    %34 = arith.addf %27, %33 : vector<1x128xf32>
    %c0_17 = arith.constant 0 : index
    %c0_18 = arith.constant 0 : index
    %35 = vector.load %arg7[%c0_17, %c0_18] : memref<1x128xf32, #tpu.memory_space<vmem>>, vector<1x128xf32>
    tpu.vector_store %arg7[%c0_17, %c0_18], %34 {strides = array<i32>} : memref<1x128xf32, #tpu.memory_space<vmem>>, vector<1x128xf32>,
    %36 = arith.subf %4, %5 : vector<8x256xf32>
    %c0_19 = arith.constant 0 : index
    %c0_20 = arith.constant 0 : index
    %37 = vector.load %arg8[%c0_19, %c0_20] : memref<1x256xf32, #tpu.memory_space<vmem>>, vector<1x256xf32>
    %38 = arith.mulf %36, %36 : vector<8x256xf32>
    %cst_21 = arith.constant dense<0.000000e+00> : vector<256xf32>
    %39 = vector.multi_reduction <add>, %38, %cst_21 [0] : vector<8x256xf32> to vector<256xf32>
    %40 = vector.shape_cast %39 : vector<256xf32> to vector<1x256xf32>
    %41 = arith.addf %37, %40 : vector<1x256xf32>
    %c0_22 = arith.constant 0 : index
    %c0_23 = arith.constant 0 : index
    %42 = vector.load %arg8[%c0_22, %c0_23] : memref<1x256xf32, #tpu.memory_space<vmem>>, vector<1x256xf32>
    tpu.vector_store %arg8[%c0_22, %c0_23], %41 {strides = array<i32>} : memref<1x256xf32, #tpu.memory_space<vmem>>, vector<1x256xf32>,
    %c0_i32_24 = arith.constant 0 : i32
    %43 = arith.cmpi eq, %arg1, %c0_i32_24 : i32
    %44 = arith.extui %43 : i1 to i32
    %c0_i32_25 = arith.constant 0 : i32
    %45 = arith.cmpi ne, %44, %c0_i32_25 : i32
    scf.if %45 {
      %c0_26 = arith.constant 0 : index
      %46 = memref.load %arg2[%c0_26] : memref<2xf32, #tpu.memory_space<smem>>
      %c0_27 = arith.constant 0 : index
      %c0_28 = arith.constant 0 : index
      %47 = vector.load %arg6[%c0_27, %c0_28] : memref<1x128xf32, #tpu.memory_space<vmem>>, vector<1x128xf32>
      %48 = vector.shape_cast %47 : vector<1x128xf32> to vector<1x1x128xf32>
      %cst_29 = arith.constant dense<0.000000e+00> : vector<1xf32>
      %49 = vector.multi_reduction <add>, %48, %cst_29 [1, 2] : vector<1x1x128xf32> to vector<1xf32>
      %50 = vector.shape_cast %49 : vector<1xf32> to vector<1x1x1xf32>
      %51 = vector.extract %50[0, 0, 0] : f32 from vector<1x1x1xf32>
      %c0_30 = arith.constant 0 : index
      %c0_31 = arith.constant 0 : index
      %52 = vector.load %arg7[%c0_30, %c0_31] : memref<1x128xf32, #tpu.memory_space<vmem>>, vector<1x128xf32>
      %53 = vector.shape_cast %52 : vector<1x128xf32> to vector<1x1x128xf32>
      %cst_32 = arith.constant dense<0.000000e+00> : vector<1xf32>
      %54 = vector.multi_reduction <add>, %53, %cst_32 [1, 2] : vector<1x1x128xf32> to vector<1xf32>
      %55 = vector.shape_cast %54 : vector<1xf32> to vector<1x1x1xf32>
      %56 = vector.extract %55[0, 0, 0] : f32 from vector<1x1x1xf32>
      %c0_33 = arith.constant 0 : index
      %c0_34 = arith.constant 0 : index
      %57 = vector.load %arg8[%c0_33, %c0_34] : memref<1x256xf32, #tpu.memory_space<vmem>>, vector<1x256xf32>
      %58 = vector.shape_cast %57 : vector<1x256xf32> to vector<1x1x256xf32>
      %cst_35 = arith.constant dense<0.000000e+00> : vector<1xf32>
      %59 = vector.multi_reduction <add>, %58, %cst_35 [1, 2] : vector<1x1x256xf32> to vector<1xf32>
      %60 = vector.shape_cast %59 : vector<1xf32> to vector<1x1x1xf32>
      %61 = vector.extract %60[0, 0, 0] : f32 from vector<1x1x1xf32>
      %cst_36 = arith.constant 4.8828125E-4 : f32
      %62 = arith.mulf %61, %cst_36 : f32
      %63 = arith.addf %51, %56 : f32
      %64 = arith.mulf %62, %46 : f32
      %65 = arith.addf %64, %63 : f32
      %66 = tpu.iota {dimensions = array<i32: 1>} : vector<8x128xi32>
      %c0_i32_37 = arith.constant 0 : i32
      %67 = vector.broadcast %c0_i32_37 : i32 to vector<8x128xi32>
      %68 = arith.cmpi eq, %66, %67 : vector<8x128xi32>
      %c1_i32 = arith.constant 1 : i32
      %69 = vector.broadcast %c1_i32 : i32 to vector<8x128xi32>
      %70 = arith.cmpi eq, %66, %69 : vector<8x128xi32>
      %c2_i32 = arith.constant 2 : i32
      %71 = vector.broadcast %c2_i32 : i32 to vector<8x128xi32>
      %72 = arith.cmpi eq, %66, %71 : vector<8x128xi32>
      %cst_38 = arith.constant 0.000000e+00 : f32
      %73 = vector.broadcast %51 : f32 to vector<8x128xf32>
      %74 = vector.broadcast %cst_38 : f32 to vector<8x128xf32>
      %75 = arith.select %72, %73, %74 : vector<8x128xi1>, vector<8x128xf32>
      %76 = vector.broadcast %63 : f32 to vector<8x128xf32>
      %77 = arith.select %70, %76, %75 : vector<8x128xi1>, vector<8x128xf32>
      %78 = vector.broadcast %65 : f32 to vector<8x128xf32>
      %79 = arith.select %68, %78, %77 : vector<8x128xi1>, vector<8x128xf32>
      %c0_39 = arith.constant 0 : index
      %c0_40 = arith.constant 0 : index
      %80 = vector.load %arg5[%c0_39, %c0_40] : memref<8x128xf32, #tpu.memory_space<vmem>>, vector<8x128xf32>
      tpu.vector_store %arg5[%c0_39, %c0_40], %79 {strides = array<i32>} : memref<8x128xf32, #tpu.memory_space<vmem>>, vector<8x128xf32>,
    } else {
    }
    return
  }
  func.func @transform_0(%arg0: i32, %arg1: i32) -> i32 {
    %c0_i32 = arith.constant 0 : i32
    %c0_i32_0 = arith.constant 0 : i32
    return %c0_i32 : i32
  }
  func.func @transform_1(%arg0: i32, %arg1: i32) -> (i32, i32) {
    %c1_i32 = arith.constant 1 : i32
    %0 = arith.muli %arg0, %c1_i32 : i32
    %1 = arith.addi %0, %arg1 : i32
    %c0_i32 = arith.constant 0 : i32
    %c0_i32_0 = arith.constant 0 : i32
    return %1, %c0_i32 : i32, i32
  }
  func.func @transform_2(%arg0: i32, %arg1: i32) -> (i32, i32) {
    %c1_i32 = arith.constant 1 : i32
    %0 = arith.muli %arg0, %c1_i32 : i32
    %1 = arith.addi %0, %arg1 : i32
    %c0_i32 = arith.constant 0 : i32
    %c0_i32_0 = arith.constant 0 : i32
    return %1, %c0_i32 : i32, i32
  }
  func.func @transform_3(%arg0: i32, %arg1: i32) -> (i32, i32) {
    %c0_i32 = arith.constant 0 : i32
    %c0_i32_0 = arith.constant 0 : i32
    return %arg0, %c0_i32 : i32, i32
  }
}

</mosaic_0001>

<bundles_post_ra>
// kernel: tpu_custom_call.1
= control target key start
LH: loop header
LB: loop body
LE: loop exit
PB: predicated region body
PF: predicated region fallthrough
CT: control target
= control target key end

     0   :  { %8 = vsyncpa [#allocation10], 0  ;;  %s400_s0 = inlined_call_operand.hbm [shape: f32[2], index: 0, kind: input, shape index: {}]   ;;  %s401_s1 = inlined_call_operand.hbm [shape: f32[8,256], index: 1, kind: input, shape index: {}]   ;;  %s402_s2 = inlined_call_operand.hbm [shape: f32[8,256], index: 2, kind: input, shape index: {}]   ;;  %s403_s3 = inlined_call_operand.hbm [shape: f32[8,128], index: 3, kind: output, shape index: {}]  }
   0x1   :  { %9 = vsyncpa [#allocation8], 0 }
   0x2   :  { %10 = vsyncpa [#allocation13], 0 }
   0x3   :  { %11 = vsyncpa [#allocation9], 0  ;;  %s347_s12 = smov [#allocation7]   ;;  %s348_s15 = smov [#allocation11]  }
   0x4   :  { %19 = dma.hbm_to_smem %s400_s0, 16, %s347_s12, [#allocation10]  }
   0x5   :  { %s30_s16 = sshll.u32 %s348_s15, 4  ;;  %s349_s17 = smov [#allocation12]   ;;  %s31_s16 = int_to_ptr.vmem [resolvable:$true] %s30_s16 }
   0x6   :  { %s44_s18 = sshll.u32 %s349_s17, 4  ;;  %s287_s19 = scalar_lea.vmem %s31_s16, 256  ;;  %s45_s18 = int_to_ptr.vmem [resolvable:$true] %s44_s18 }
   0x7   :  { %p288_p0 = scmp.ne.s32.totalorder %s31_s16, %s287_s19  ;;  %p292_p1 = scmp.lt.s32.totalorder %s31_s16, %s31_s16 }
   0x8   :  { %p293_p2 = scmp.lt.s32.totalorder %s287_s19, %s287_s19 }
   0xa   :  { %p294_p3 = por %p293_p2, %p292_p1 }
   0xc   :  { %p295_p4 = pnand %p294_p3, %p288_p0 }
   0xe   :  { %298 = shalt.err (!%p295_p4)
}
   0xf   :  { %33 = dma.hbm_to_vmem [thread:$0]  %s401_s1, 256, %s31_s16, [#allocation8]  }
  0x10   :  { %s307_s22 = scalar_lea.vmem %s45_s18, 256  ;;  %p312_p6 = scmp.lt.s32.totalorder %s45_s18, %s45_s18 }
  0x11   :  { %p308_p5 = scmp.ne.s32.totalorder %s45_s18, %s307_s22  ;;  %p313_p7 = scmp.lt.s32.totalorder %s307_s22, %s307_s22 }
  0x13   :  { %p314_p8 = por %p313_p7, %p312_p6 }
  0x15   :  { %p315_p9 = pnand %p314_p8, %p308_p5 }
  0x17   :  { %318 = shalt.err (!%p315_p9)
}
  0x18   :  { %47 = dma.hbm_to_vmem [thread:$0]  %s402_s2, 256, %s45_s18, [#allocation13]  }
  0x19   :  { %339 = dma.done.wait [#allocation10], 16  }
  0x1a   :  { %340 = vsyncadd [#allocation10], 4294967280 }
  0x1b   :  { %341 = dma.done.wait [#allocation8], 256  }
  0x1c   :  { %342 = vsyncadd [#allocation8], 4294967040 }
  0x1d   :  { %343 = dma.done.wait [#allocation13], 256  }
  0x1e   :  { %344 = vsyncadd [#allocation13], 4294967040 }
  0x1f   :  { %57 = sfence }
  0x20   :  { %v66_v0 = vlaneseq  ;;  %s256_s1 = sld [smem:[#allocation7 + $0x1]]  ;;  %v82_v1 = vld [vmem:[#allocation11] sm:$0xff]  ;;  %v83_v2 = vld [vmem:[#allocation11 + $0x8] sm:$0xff]  ;;  %v84_v3 = vld [vmem:[#allocation12] sm:$0xff]  ;;  %v350_v6 = vmov 0.0   ;;  %vm175_vm3 = vcmask 1040384  }
  0x21   :  { %v85_v4 = vld [vmem:[#allocation12 + $0x8] sm:$0xff]  ;;  %v129_v5 = vsub.f32 %v82_v1, %v84_v3  ;;  %64 = vst [vmem:[#allocation2] sm:$0x1] %v350_v6  ;;  %65 = vst [vmem:[#allocation3] sm:$0x1] %v350_v6  ;;  %s173_s2 = sld [smem:[#allocation7]] }
  0x22   :  { %vm382_vm0 = vcmp.lt.s32.totalorder %v66_v0, 256  ;;  %v386_v8 = vand.u32 127, %v66_v0  ;;  %v130_v9 = vsub.f32 %v83_v2, %v85_v4  ;;  %v351_v21 = vmov 1966171168   ;;  %s352_s30 = smov [#allocation14]  }
  0x23   :  { %70 = vst.msk [vmem:[#allocation4] sm:$0x3] %vm382_vm0, %v350_v6  ;;  %v132_v10 = vmul.f32 %v129_v5, %v129_v5  ;;  %v150_v22 = vunpack.c.l.s4 %v351_v21  ;;  %v153_v28 = vshrl.u32 %v66_v0, 7  ;;  %s243_s4 = sshll.u32 %s352_s30, 4  ;;  %s244_s4 = int_to_ptr.vmem [resolvable:$true] %s243_s4 }
  0x24   :  { %vm73_vm1 = vcmp.lt.s32.totalorder %v386_v8, 64  ;;  %vm77_vm2 = vcmp.ge.s32.totalorder %v386_v8, 64  ;;  %v133_v11 = vmul.f32 %v130_v9, %v130_v9  ;;  %vm229_vm4 = vcmp.eq.s32.totalorder %v386_v8, 2  ;;  %s319_s6 = scalar_lea.vmem %s244_s4, 128  ;;  %p324_p11 = scmp.lt.s32.totalorder %s244_s4, %s244_s4 }
  0x25   :  { %v254_v12 = vsel %vm73_vm1, 1.0, %v350_v6  ;;  %v255_v13 = vsel %vm77_vm2, 1.0, %v350_v6  ;;  %v134_v14 = vrot.slane %v132_v10, 4  ;;  %v151_v32 = vunpack.c.0.s8 %v150_v22  ;;  %p320_p10 = scmp.ne.s32.totalorder %s244_s4, %s319_s6  ;;  %p325_p12 = scmp.lt.s32.totalorder %s319_s6, %s319_s6 }
  0x26   :  { %76 = vst [vmem:[#allocation5] sm:$0x1] %v254_v12  ;;  %80 = vst [vmem:[#allocation6] sm:$0x1] %v255_v13  ;;  %v86_v15 = vstv %s256_s1  ;;  %v140_v16 = vrot.slane %v133_v11, 4  ;;  %v201_v63 = vsub.s32 0, %v153_v28 }
  0x27   :  { %v87_v17 = vmul.f32 %v86_v15, %v83_v2  ;;  %v90_v18 = vmul.f32 %v86_v15, %v82_v1  ;;  %v135_v19 = vadd.f32 %v134_v14, %v132_v10  ;;  %v154_v43 = vsub.s32 %v151_v32, %v153_v28  ;;  %p326_p13 = por %p325_p12, %p324_p11 }
  0x28   :  { %v141_v20 = vadd.f32 %v140_v16, %v133_v11  ;;  %v93_v59 = vld [vmem:[#allocation2] sm:$0x1]  ;;  %v111_v60 = vld [vmem:[#allocation3] sm:$0x1]  ;;  %v205_v0 = vsub.s32 1, %v153_v28  ;;  %vm228_vm5 = vcmp.eq.s32.totalorder %v386_v8, 1 }
  0x29   :  { %v88_v23 = vsub.f32 %v82_v1, %v87_v17  ;;  %v91_v24 = vsub.f32 %v83_v2, %v90_v18  ;;  %v136_v25 = vrot.slane %v135_v19, 2  ;;  %vm227_vm6 = vcmp.eq.s32.totalorder %v386_v8, 0  ;;  %p327_p0 = pnand %p326_p13, %p320_p10 }
  0x2a   :  { %v142_v26 = vrot.slane %v141_v20, 2  ;;  %v131_v50 = vld [vmem:[#allocation4] sm:$0x3] }
  0x2b   :  { %v137_v27 = vadd.f32 %v136_v25, %v135_v19  ;;  %v89_v29 = vmax.f32 %v88_v23, 0.0  ;;  %v92_v30 = vmax.f32 %v91_v24, 0.0 }
  0x2c   :  { %v143_v31 = vadd.f32 %v142_v26, %v141_v20 }
  0x2d   :  { %v257_v33 = vld [vmem:[#allocation5] ss:$0 sm:$0xff]  ;;  %v258_v34 = vld [vmem:[#allocation6] ss:$0 sm:$0xff]  ;;  %v138_v35 = vrot.slane %v137_v27, 1 }
  0x2e   :  { %v101_v36 = vmul.f32 %v257_v33, %v82_v1  ;;  %v119_v37 = vmul.f32 %v258_v34, %v83_v2  ;;  %v144_v38 = vrot.slane %v143_v31, 1 }
  0x2f   :  { %v139_v39 = vadd.f32 %v138_v35, %v137_v27 }
  0x30   :  { %v102_v40 = vadd.f32 %v101_v36, %v89_v29  ;;  %v120_v41 = vadd.f32 %v119_v37, %v92_v30  ;;  %v145_v42 = vadd.f32 %v144_v38, %v143_v31 }
  0x32   :  { %v103_v44 = vrot.slane %v102_v40, 4  ;;  %v121_v45 = vrot.slane %v120_v41, 4  ;;  %v148_v46 = vcombine.low %v139_v39, %v145_v42 }
  0x34   :  { %v104_v47 = vadd.f32 %v103_v44, %v102_v40  ;;  %v122_v48 = vadd.f32 %v121_v45, %v120_v41  ;;  %v155_v49 = vrot.slane %v148_v46, %v154_v43 }
  0x36   :  { %v105_v51 = vrot.slane %v104_v47, 2  ;;  %v123_v52 = vrot.slane %v122_v48, 2  ;;  %v162_v53 = vrot.slane %v155_v49, %v154_v43 }
  0x38   :  { %v124_v54 = vadd.f32 %v123_v52, %v122_v48  ;;  %v164_v55 = vadd.f32 %v162_v53, %v131_v50  ;;  %v106_v56 = vadd.f32 %v105_v51, %v104_v47 }
  0x3a   :  { %169 = vst.msk [vmem:[#allocation4] sm:$0x3] %vm382_vm0, %v164_v55  ;;  %v107_v57 = vrot.slane %v106_v56, 1  ;;  %v125_v58 = vrot.slane %v124_v54, 1 }
  0x3c   :  { %v108_v61 = vadd.f32 %v107_v57, %v106_v56  ;;  %v126_v62 = vadd.f32 %v125_v58, %v124_v54 }
  0x3e   :  { %v109_v1 = vadd.f32 %v108_v61, %v93_v59  ;;  %v127_v2 = vadd.f32 %v126_v62, %v111_v60 }
  0x40   :  { %110 = vst [vmem:[#allocation2] sm:$0x1] %v109_v1  ;;  %128 = vst [vmem:[#allocation3] sm:$0x1] %v127_v2 }
  0x41   :  { %v197_v3 = vld [vmem:[#allocation4] sm:$0x3] }
  0x42   :  { %v202_v4 = vrot.slane %v197_v3, %v201_v63  ;;  %v206_v5 = vrot.slane %v197_v3, %v205_v0 }
  0x44   :  { %v209_v6 = vsel %vm175_vm3, %v202_v4, 0.0  ;;  %v210_v9 = vsel %vm175_vm3, %v206_v5, 0.0 }
  0x45   :  { %v211_v7 = vadd.f32 %v210_v9, %v209_v6 }
  0x47   :  { %212 = vadd.xlane.f32.xlu1 %v211_v7  ;;  %v174_v10 = vld [vmem:[#allocation2] sm:$0x1]  ;;  %v186_v11 = vld [vmem:[#allocation3] sm:$0x1] }
  0x48   :  { %v176_v12 = vsel %vm175_vm3, %v174_v10, 0.0  ;;  %v187_v13 = vsel %vm175_vm3, %v186_v11, 0.0 }
  0x49   :  { %177 = vadd.xlane.f32.xlu0 %v176_v12 }
  0x4d   :  { %188 = vadd.xlane.f32.xlu0 %v187_v13 }
  0xd0   :  { %v213_v14 = vpop.xlane.xlu1 %212 }
  0xd1   :  { %v214_v15 = vrot.slane %v213_v14, 4 }
  0xd2   :  { %v178_v16 = vpop.xlane.xlu0 %177 }
  0xd3   :  { %v215_v17 = vadd.f32 %v214_v15, %v213_v14  ;;  %v179_v18 = vrot.slane %v178_v16, 4 }
  0xd5   :  { %v180_v19 = vadd.f32 %v179_v18, %v178_v16  ;;  %v216_v20 = vrot.slane %v215_v17, 2 }
  0xd6   :  { %v189_v21 = vpop.xlane.xlu0 %188 }
  0xd7   :  { %v181_v22 = vrot.slane %v180_v19, 2  ;;  %v190_v23 = vrot.slane %v189_v21, 4  ;;  %v217_v26 = vadd.f32 %v216_v20, %v215_v17 }
  0xd9   :  { %v191_v24 = vadd.f32 %v190_v23, %v189_v21  ;;  %v182_v25 = vadd.f32 %v181_v22, %v180_v19  ;;  %v218_v31 = vrot.slane %v217_v26, 1 }
  0xdb   :  { %v192_v27 = vrot.slane %v191_v24, 2  ;;  %v183_v28 = vrot.slane %v182_v25, 1  ;;  %v219_v34 = vadd.f32 %v218_v31, %v217_v26 }
  0xdd   :  { %v193_v29 = vadd.f32 %v192_v27, %v191_v24  ;;  %v184_v30 = vadd.f32 %v183_v28, %v182_v25 }
  0xdf   :  { %259 = vpush %v184_v30  ;;  %v194_v32 = vrot.slane %v193_v29, 1 }
  0xe1   :  { %v195_v33 = vadd.f32 %v194_v32, %v193_v29 }
  0xe3   :  { %261 = vpush %v195_v33 }
  0xe4   :  { %263 = vpush %v219_v34 }
 0x110   :  { %s260_s24 = spop %259 }
 0x111   :  { %v230_v35 = vstv %s260_s24 }
 0x112   :  { %v231_v37 = vsel %vm229_vm4, %v230_v35, 0.0 }
 0x114   :  { %s262_s25 = spop %261 }
 0x115   :  { %s222_s26 = sadd.f32 %s262_s25, %s260_s24  ;;  %s264_s27 = spop %263 }
 0x116   :  { %s221_s28 = smul.f32 0.00048828125, %s264_s27 }
 0x117   :  { %v232_v36 = vstv %s222_s26 }
 0x118   :  { %s223_s29 = smul.f32 %s221_s28, %s173_s2  ;;  %v233_v38 = vsel %vm228_vm5, %v232_v36, %v231_v37 }
 0x11a   :  { %s224_s5 = sadd.f32 %s223_s29, %s222_s26 }
 0x11c   :  { %v234_v39 = vstv %s224_s5 }
 0x11d   :  { %v235_v40 = vsel %vm227_vm6, %v234_v39, %v233_v38 }
 0x11e   :  { %236 = vst [vmem:[#allocation14] sm:$0xff] %v235_v40 }
 0x11f   :  { %330 = shalt.err (!%p327_p0)
}
 0x120   :  { %246 = dma.vmem_to_hbm [thread:$0]  %s244_s4, 128, %s403_s3, [#allocation9]  }
 0x121   :  { %345 = dma.done.wait [#allocation9], 128  }
 0x122   :  { %346 = vsyncadd [#allocation9], 4294967168 }
 0x123   :  { %250 = vsyncpa [#allocation8], 1 }
 0x124   :  { %251 = vsyncpa [#allocation13], 1 }
 0x125   :  { %252 = vsyncpa [#allocation9], 1 }
 0x126   :  { %253 = vsyncpa [#allocation10], 1 }

</bundles_post_ra>
